<compile_context>
chip_gen: v7x
topology: tpu7x:2x2x1
jax: 0.10.0
libtpu: 0.0.40
codegen_flags: <defaults>
</compile_context>

<pallas_src>
import math

import jax
import jax.numpy as jnp
from jax import lax
from jax.experimental import pallas as pl
from jax.experimental.pallas import tpu as pltpu

FEATURES = (46, 20, 20, 20, 10, 1)


def regnet_kernel(x_ref,
                  w1_ref, b1_ref,
                  w2_ref, b2_ref,
                  w3_ref, b3_ref,
                  w4_ref, b4_ref,
                  w5_ref, b5_ref,
                  o_ref):
    """Fused 5-layer MLP forward for one batch tile.

    x_ref:  (TB, 46)   input rows (row-major, like torch.nn.Linear input)
    w{i}:   (out, in)  PyTorch-layout weights;  b{i}: (out, 1) column biases
    o_ref:  (1, TB)    lane-dense output row for this tile

    Everything is computed transposed: h^T = W @ h^T + b, so the final result
    is naturally a (1, TB) lane-dense row (no masked 1-lane stores).
    """
    x = x_ref[...].astype(jnp.float32)                        # (TB, 46)

    # Layer 1: (20, 46) contracted with (TB, 46) over the feature dim
    # (same a @ b^T pattern as q @ k^T in flash attention) -> (20, TB).
    h = lax.dot_general(w1_ref[...], x, (((1,), (1,)), ((), ())),
                        preferred_element_type=jnp.float32)
    h = jnp.maximum(h + b1_ref[...], 0.0)     # relu; dropout = identity (eval)

    h = jnp.dot(w2_ref[...], h, preferred_element_type=jnp.float32)
    h = jnp.maximum(h + b2_ref[...], 0.0)

    h = jnp.dot(w3_ref[...], h, preferred_element_type=jnp.float32)
    h = jnp.maximum(h + b3_ref[...], 0.0)

    h = jnp.dot(w4_ref[...], h, preferred_element_type=jnp.float32)
    h = jnp.maximum(h + b4_ref[...], 0.0)

    out = jnp.dot(w5_ref[...], h, preferred_element_type=jnp.float32)
    out = out + b5_ref[...]                                   # (1, TB)
    o_ref[...] = out.astype(o_ref.dtype)


def regnet_forward(x, params, *, block_rows=1024):
    """Tiled Pallas forward.  x: (batch, 46) -> (batch, 1) float32."""
    batch, in_dim = x.shape
    assert in_dim == FEATURES[0], in_dim

    # Tile must be a multiple of 128 so the (1, TB) output block is lane-dense
    # and the (TB, 46) x block satisfies the (8, 128) sublane constraint.
    block_rows = max(128, int(block_rows))
    assert block_rows % 128 == 0, block_rows

    num_tiles = pl.cdiv(batch, block_rows)
    padded = num_tiles * block_rows
    if padded != batch:
        x = jnp.concatenate(
            [x, jnp.zeros((padded - batch, in_dim), x.dtype)], axis=0)

    flat_params = []
    for i in range(1, 6):
        flat_params += [params[f"w{i}"], params[f"b{i}"]]
    # Constant index maps -> weights/biases fetched once, stay VMEM-resident.
    param_specs = [pl.BlockSpec(p.shape, lambda i: (0, 0)) for p in flat_params]

    flops = 2 * padded * sum(FEATURES[i] * FEATURES[i + 1] for i in range(5))
    param_bytes = sum(int(p.size) * p.dtype.itemsize for p in flat_params)
    bytes_accessed = (padded * in_dim * x.dtype.itemsize   # read x
                      + padded * 4                         # write out
                      + param_bytes)                       # read params once

    out = pl.pallas_call(
        regnet_kernel,
        grid=(num_tiles,),
        in_specs=[pl.BlockSpec((block_rows, in_dim), lambda i: (i, 0))]
                 + param_specs,
        out_specs=pl.BlockSpec((1, block_rows), lambda i: (0, i)),
        out_shape=jax.ShapeDtypeStruct((1, padded), jnp.float32),
        compiler_params=pltpu.CompilerParams(
            dimension_semantics=("parallel",)),
        cost_estimate=pl.CostEstimate(
            flops=flops, transcendentals=0, bytes_accessed=bytes_accessed),
    )(x, *flat_params)

    return out.reshape(padded, 1)[:batch]


def reference_forward(x, params):
    """Pure-JAX reference (also the fused fallback path for tiny batches)."""
    h = x.astype(jnp.float32)
    for i in range(1, 5):
        h = jnp.maximum(h @ params[f"w{i}"].T + params[f"b{i}"].T, 0.0)
    return h @ params["w5"].T + params["b5"].T


def regnet_apply(x, params, *, block_rows=1024, min_pallas_rows=256):
    """Dispatch: tiny batches -> fused XLA dots (launch overhead dominates);
    large batches -> tiled Pallas kernel."""
    if x.shape[0] < min_pallas_rows:
        return reference_forward(x, params)
    return regnet_forward(x, params, block_rows=block_rows)


def init_params(key):
    """nn.Linear-style init (uniform +/- 1/sqrt(fan_in)), PyTorch (out, in)
    weight layout and (out, 1) column biases."""
    dims = [(20, 46), (20, 20), (20, 20), (10, 20), (1, 10)]
    params = {}
    for idx, (fan_out, fan_in) in enumerate(dims, start=1):
        key, kw, kb = jax.random.split(key, 3)
        bound = 1.0 / math.sqrt(fan_in)
        params[f"w{idx}"] = jax.random.uniform(
            kw, (fan_out, fan_in), jnp.float32, -bound, bound)
        params[f"b{idx}"] = jax.random.uniform(
            kb, (fan_out, 1), jnp.float32, -bound, bound)
    return params


if __name__ == "__main__":
    key = jax.random.PRNGKey(0)
    key, kx = jax.random.split(key)

    # Small absolute size, but exercises the multi-tile + remainder-padding
    # path (300 rows, 128-row tiles -> 3 grid steps, padded to 384).
    batch = 300
    x = jax.random.normal(kx, (batch, 46), jnp.float32)
    params = init_params(key)

    out = regnet_forward(x, params, block_rows=128)
    out = jax.block_until_ready(out)

    ref = reference_forward(x, params)
    assert out.shape == (batch, 1), out.shape
    max_err = float(jnp.max(jnp.abs(out - ref)))
    assert jnp.allclose(out, ref, atol=1e-4, rtol=1e-4), max_err

    print("KERNEL_OK")
</pallas_src>

<mosaic_0001>
module attributes {stable_mosaic.version = 11 : i64} {
  func.func @regnet_kernel(%arg0: i32, %arg1: memref<128x46xf32, #tpu.memory_space<vmem>>, %arg2: memref<20x46xf32, #tpu.memory_space<vmem>>, %arg3: memref<20x1xf32, #tpu.memory_space<vmem>>, %arg4: memref<20x20xf32, #tpu.memory_space<vmem>>, %arg5: memref<20x1xf32, #tpu.memory_space<vmem>>, %arg6: memref<20x20xf32, #tpu.memory_space<vmem>>, %arg7: memref<20x1xf32, #tpu.memory_space<vmem>>, %arg8: memref<10x20xf32, #tpu.memory_space<vmem>>, %arg9: memref<10x1xf32, #tpu.memory_space<vmem>>, %arg10: memref<1x10xf32, #tpu.memory_space<vmem>>, %arg11: memref<1x1xf32, #tpu.memory_space<vmem>>, %arg12: memref<1x128xf32, #tpu.memory_space<vmem>>) attributes {dimension_semantics = [#tpu.dimension_semantics<parallel>], iteration_bounds = array<i64: 3>, scalar_prefetch = 0 : i64, scratch_operands = 0 : i64, tpu.core_type = #tpu.core_type<tc>, window_params = [{transform_indices = @transform_0, window_bounds = array<i64: 128, 46>}, {pipeline_mode = #tpu.pipeline_mode<synchronous>, transform_indices = @transform_1, window_bounds = array<i64: 20, 46>}, {pipeline_mode = #tpu.pipeline_mode<synchronous>, transform_indices = @transform_2, window_bounds = array<i64: 20, 1>}, {pipeline_mode = #tpu.pipeline_mode<synchronous>, transform_indices = @transform_3, window_bounds = array<i64: 20, 20>}, {pipeline_mode = #tpu.pipeline_mode<synchronous>, transform_indices = @transform_4, window_bounds = array<i64: 20, 1>}, {pipeline_mode = #tpu.pipeline_mode<synchronous>, transform_indices = @transform_5, window_bounds = array<i64: 20, 20>}, {pipeline_mode = #tpu.pipeline_mode<synchronous>, transform_indices = @transform_6, window_bounds = array<i64: 20, 1>}, {pipeline_mode = #tpu.pipeline_mode<synchronous>, transform_indices = @transform_7, window_bounds = array<i64: 10, 20>}, {pipeline_mode = #tpu.pipeline_mode<synchronous>, transform_indices = @transform_8, window_bounds = array<i64: 10, 1>}, {pipeline_mode = #tpu.pipeline_mode<synchronous>, transform_indices = @transform_9, window_bounds = array<i64: 1, 10>}, {pipeline_mode = #tpu.pipeline_mode<synchronous>, transform_indices = @transform_10, window_bounds = array<i64: 1, 1>}, {transform_indices = @transform_11, window_bounds = array<i64: 1, 128>}]} {
    %c0 = arith.constant 0 : index
    %c0_0 = arith.constant 0 : index
    %0 = vector.load %arg1[%c0, %c0_0] : memref<128x46xf32, #tpu.memory_space<vmem>>, vector<128x46xf32>
    %c0_1 = arith.constant 0 : index
    %c0_2 = arith.constant 0 : index
    %1 = vector.load %arg2[%c0_1, %c0_2] : memref<20x46xf32, #tpu.memory_space<vmem>>, vector<20x46xf32>
    %cst = arith.constant dense<0.000000e+00> : vector<20x128xf32>
    %2 = tpu.matmul %1, %0, %cst {dimension_numbers = #tpu.dot_dimension_numbers<[1], [1], [0], [0], [0, 0, 1, 0], [], []>} : vector<20x46xf32>, vector<128x46xf32>, vector<20x128xf32> -> vector<20x128xf32>
    %c0_3 = arith.constant 0 : index
    %c0_4 = arith.constant 0 : index
    %3 = vector.load %arg3[%c0_3, %c0_4] : memref<20x1xf32, #tpu.memory_space<vmem>>, vector<20x1xf32>
    %4 = vector.broadcast %3 : vector<20x1xf32> to vector<20x128xf32>
    %5 = arith.addf %2, %4 : vector<20x128xf32>
    %cst_5 = arith.constant 0.000000e+00 : f32
    %6 = vector.broadcast %cst_5 : f32 to vector<20x128xf32>
    %7 = arith.maximumf %5, %6 : vector<20x128xf32>
    %c0_6 = arith.constant 0 : index
    %c0_7 = arith.constant 0 : index
    %8 = vector.load %arg4[%c0_6, %c0_7] : memref<20x20xf32, #tpu.memory_space<vmem>>, vector<20x20xf32>
    %cst_8 = arith.constant dense<0.000000e+00> : vector<20x128xf32>
    %9 = tpu.matmul %8, %7, %cst_8 {dimension_numbers = #tpu.dot_dimension_numbers<[1], [0], [0], [1], [0, 0, 1, 1], [], []>} : vector<20x20xf32>, vector<20x128xf32>, vector<20x128xf32> -> vector<20x128xf32>
    %c0_9 = arith.constant 0 : index
    %c0_10 = arith.constant 0 : index
    %10 = vector.load %arg5[%c0_9, %c0_10] : memref<20x1xf32, #tpu.memory_space<vmem>>, vector<20x1xf32>
    %11 = vector.broadcast %10 : vector<20x1xf32> to vector<20x128xf32>
    %12 = arith.addf %9, %11 : vector<20x128xf32>
    %cst_11 = arith.constant 0.000000e+00 : f32
    %13 = vector.broadcast %cst_11 : f32 to vector<20x128xf32>
    %14 = arith.maximumf %12, %13 : vector<20x128xf32>
    %c0_12 = arith.constant 0 : index
    %c0_13 = arith.constant 0 : index
    %15 = vector.load %arg6[%c0_12, %c0_13] : memref<20x20xf32, #tpu.memory_space<vmem>>, vector<20x20xf32>
    %cst_14 = arith.constant dense<0.000000e+00> : vector<20x128xf32>
    %16 = tpu.matmul %15, %14, %cst_14 {dimension_numbers = #tpu.dot_dimension_numbers<[1], [0], [0], [1], [0, 0, 1, 1], [], []>} : vector<20x20xf32>, vector<20x128xf32>, vector<20x128xf32> -> vector<20x128xf32>
    %c0_15 = arith.constant 0 : index
    %c0_16 = arith.constant 0 : index
    %17 = vector.load %arg7[%c0_15, %c0_16] : memref<20x1xf32, #tpu.memory_space<vmem>>, vector<20x1xf32>
    %18 = vector.broadcast %17 : vector<20x1xf32> to vector<20x128xf32>
    %19 = arith.addf %16, %18 : vector<20x128xf32>
    %cst_17 = arith.constant 0.000000e+00 : f32
    %20 = vector.broadcast %cst_17 : f32 to vector<20x128xf32>
    %21 = arith.maximumf %19, %20 : vector<20x128xf32>
    %c0_18 = arith.constant 0 : index
    %c0_19 = arith.constant 0 : index
    %22 = vector.load %arg8[%c0_18, %c0_19] : memref<10x20xf32, #tpu.memory_space<vmem>>, vector<10x20xf32>
    %cst_20 = arith.constant dense<0.000000e+00> : vector<10x128xf32>
    %23 = tpu.matmul %22, %21, %cst_20 {dimension_numbers = #tpu.dot_dimension_numbers<[1], [0], [0], [1], [0, 0, 1, 1], [], []>} : vector<10x20xf32>, vector<20x128xf32>, vector<10x128xf32> -> vector<10x128xf32>
    %c0_21 = arith.constant 0 : index
    %c0_22 = arith.constant 0 : index
    %24 = vector.load %arg9[%c0_21, %c0_22] : memref<10x1xf32, #tpu.memory_space<vmem>>, vector<10x1xf32>
    %25 = vector.broadcast %24 : vector<10x1xf32> to vector<10x128xf32>
    %26 = arith.addf %23, %25 : vector<10x128xf32>
    %cst_23 = arith.constant 0.000000e+00 : f32
    %27 = vector.broadcast %cst_23 : f32 to vector<10x128xf32>
    %28 = arith.maximumf %26, %27 : vector<10x128xf32>
    %c0_24 = arith.constant 0 : index
    %c0_25 = arith.constant 0 : index
    %29 = vector.load %arg10[%c0_24, %c0_25] : memref<1x10xf32, #tpu.memory_space<vmem>>, vector<1x10xf32>
    %cst_26 = arith.constant dense<0.000000e+00> : vector<1x128xf32>
    %30 = tpu.matmul %29, %28, %cst_26 {dimension_numbers = #tpu.dot_dimension_numbers<[1], [0], [0], [1], [0, 0, 1, 1], [], []>} : vector<1x10xf32>, vector<10x128xf32>, vector<1x128xf32> -> vector<1x128xf32>
    %c0_27 = arith.constant 0 : index
    %c0_28 = arith.constant 0 : index
    %31 = vector.load %arg11[%c0_27, %c0_28] : memref<1x1xf32, #tpu.memory_space<vmem>>, vector<1x1xf32>
    %32 = vector.broadcast %31 : vector<1x1xf32> to vector<1x128xf32>
    %33 = arith.addf %30, %32 : vector<1x128xf32>
    %c0_29 = arith.constant 0 : index
    %c0_30 = arith.constant 0 : index
    %34 = vector.load %arg12[%c0_29, %c0_30] : memref<1x128xf32, #tpu.memory_space<vmem>>, vector<1x128xf32>
    tpu.vector_store %arg12[%c0_29, %c0_30], %33 {strides = array<i32>} : memref<1x128xf32, #tpu.memory_space<vmem>>, vector<1x128xf32>,
    return
  }
  func.func @transform_0(%arg0: i32) -> (i32, i32) {
    %c0_i32 = arith.constant 0 : i32
    %c0_i32_0 = arith.constant 0 : i32
    return %arg0, %c0_i32 : i32, i32
  }
  func.func @transform_1(%arg0: i32) -> (i32, i32) {
    %c0_i32 = arith.constant 0 : i32
    %c0_i32_0 = arith.constant 0 : i32
    %c0_i32_1 = arith.constant 0 : i32
    return %c0_i32, %c0_i32_0 : i32, i32
  }
  func.func @transform_2(%arg0: i32) -> (i32, i32) {
    %c0_i32 = arith.constant 0 : i32
    %c0_i32_0 = arith.constant 0 : i32
    %c0_i32_1 = arith.constant 0 : i32
    return %c0_i32, %c0_i32_0 : i32, i32
  }
  func.func @transform_3(%arg0: i32) -> (i32, i32) {
    %c0_i32 = arith.constant 0 : i32
    %c0_i32_0 = arith.constant 0 : i32
    %c0_i32_1 = arith.constant 0 : i32
    return %c0_i32, %c0_i32_0 : i32, i32
  }
  func.func @transform_4(%arg0: i32) -> (i32, i32) {
    %c0_i32 = arith.constant 0 : i32
    %c0_i32_0 = arith.constant 0 : i32
    %c0_i32_1 = arith.constant 0 : i32
    return %c0_i32, %c0_i32_0 : i32, i32
  }
  func.func @transform_5(%arg0: i32) -> (i32, i32) {
    %c0_i32 = arith.constant 0 : i32
    %c0_i32_0 = arith.constant 0 : i32
    %c0_i32_1 = arith.constant 0 : i32
    return %c0_i32, %c0_i32_0 : i32, i32
  }
  func.func @transform_6(%arg0: i32) -> (i32, i32) {
    %c0_i32 = arith.constant 0 : i32
    %c0_i32_0 = arith.constant 0 : i32
    %c0_i32_1 = arith.constant 0 : i32
    return %c0_i32, %c0_i32_0 : i32, i32
  }
  func.func @transform_7(%arg0: i32) -> (i32, i32) {
    %c0_i32 = arith.constant 0 : i32
    %c0_i32_0 = arith.constant 0 : i32
    %c0_i32_1 = arith.constant 0 : i32
    return %c0_i32, %c0_i32_0 : i32, i32
  }
  func.func @transform_8(%arg0: i32) -> (i32, i32) {
    %c0_i32 = arith.constant 0 : i32
    %c0_i32_0 = arith.constant 0 : i32
    %c0_i32_1 = arith.constant 0 : i32
    return %c0_i32, %c0_i32_0 : i32, i32
  }
  func.func @transform_9(%arg0: i32) -> (i32, i32) {
    %c0_i32 = arith.constant 0 : i32
    %c0_i32_0 = arith.constant 0 : i32
    %c0_i32_1 = arith.constant 0 : i32
    return %c0_i32, %c0_i32_0 : i32, i32
  }
  func.func @transform_10(%arg0: i32) -> (i32, i32) {
    %c0_i32 = arith.constant 0 : i32
    %c0_i32_0 = arith.constant 0 : i32
    %c0_i32_1 = arith.constant 0 : i32
    return %c0_i32, %c0_i32_0 : i32, i32
  }
  func.func @transform_11(%arg0: i32) -> (i32, i32) {
    %c0_i32 = arith.constant 0 : i32
    %c0_i32_0 = arith.constant 0 : i32
    return %c0_i32, %arg0 : i32, i32
  }
}

</mosaic_0001>

<bundles_post_ra>
// kernel: tpu_custom_call.1
= control target key start
LH: loop header
LB: loop body
LE: loop exit
PB: predicated region body
PF: predicated region fallthrough
CT: control target
= control target key end

     0   :  { %s1706_s0 = inlined_call_operand.vmem [shape: f32[384,46], index: 0, kind: input, shape index: {}]   ;;  %s1707_s1 = inlined_call_operand.vmem [shape: f32[20,46], index: 1, kind: input, shape index: {}]   ;;  %s1708_s2 = inlined_call_operand.vmem [shape: f32[20,1], index: 2, kind: input, shape index: {}]   ;;  %s1709_s3 = inlined_call_operand.vmem [shape: f32[20,20], index: 3, kind: input, shape index: {}]   ;;  %s1710_s4 = inlined_call_operand.vmem [shape: f32[20,1], index: 4, kind: input, shape index: {}]   ;;  %s1711_s5 = inlined_call_operand.vmem [shape: f32[20,20], index: 5, kind: input, shape index: {}]   ;;  %s1712_s6 = inlined_call_operand.vmem [shape: f32[20,1], index: 6, kind: input, shape index: {}]   ;;  %s1713_s7 = inlined_call_operand.vmem [shape: f32[10,20], index: 7, kind: input, shape index: {}]   ;;  %s1714_s8 = inlined_call_operand.vmem [shape: f32[10,1], index: 8, kind: input, shape index: {}]   ;;  %s1715_s9 = inlined_call_operand.vmem [shape: f32[1,10], index: 9, kind: input, shape index: {}]   ;;  %s1716_s10 = inlined_call_operand.<no memory space> [shape: f32[1,1], index: 10, kind: input, shape index: {}]   ;;  %s1717_s11 = inlined_call_operand.hbm [shape: f32[1,384], index: 11, kind: output, shape index: {}]  }
   0x1   :  { %v16_v0 = vstv %s1716_s10 }
   0x2   :  { %17 = vst [vmem:[#allocation2] sm:$0x1] %v16_v0 }
   0x3   :  { %18 = vsyncpa [#allocation4], 0 }
   0x4   :  { %20 = vsyncpa [#allocation4 + $0x1], 0  ;;  %s1450_s19 = smov 0   ;;  %s1452_s20 = smov 0  }
   0x5   :  { %s1454_s21 = smov 0   ;;  %s1456_s22 = smov 0  }
   0x6 LB: > { %s1057_s10 = sadd.s32 4294967295, %s1379_s22   ;;  %s1058_s23 = sadd.s32 4294967294, %s1379_s22   ;;  %s1379_s22 = sphi %s1456_s22, %s1725_s22   ;;  %s1375_s21 = sphi %s1454_s21, %s1724_s21   ;;  %s1371_s20 = sphi %s1452_s20, %s1723_s20   ;;  %s1367_s19 = sphi %s1450_s19, %s1722_s19  }
   0x7   : > { %s1473_s24 = sadd.s32 1, %s1379_s22   ;;  %s269_s25 = sadd.s32 1, %s1375_s21 }
   0x8   : > { %s266_s26 = ssub.s32 %s1379_s22, %s1473_s24  ;;  %p279_p0 = scmp.ne.s32.totalorder %s1375_s21, %s1371_s20 }
   0x9   : > { %p267_p1 = scmp.eq.s32.totalorder %s266_s26, 0  ;;  %p280_p2 = scmp.eq.s32.totalorder %s1057_s10, 2 }
   0xa   : > { %p285_p3 = scmp.ne.s32.totalorder %s1371_s20, %s1367_s19  ;;  %p286_p4 = scmp.eq.s32.totalorder %s1058_s23, 2 }
   0xb   : > { %s1483_s27 = scalar_select %p267_p1, %s1375_s21, %s269_s25  }
   0xc   : > { %p1485_p5 = por %p280_p2, %p279_p0  ;;  %p1489_p6 = por %p286_p4, %p285_p3 }
   0xd   : > { %p1061_p7 = scmp.ge.s32.totalorder %s1379_s22, 1  ;;  %p343_p8 = scmp.lt.s32.totalorder %s1379_s22, 4 }
   0xf   : > { %p344_p9 = pnand %p1061_p7, %p343_p8 }
  0x10   : > { %s1495_s30 = sshll.u32 (!%p344_p9), %s1057_s10, 4  ;;  %v1381_v1 = vmov (!%p344_p9), 0.0|0.0   ;;  %vm1382_vm0 = vmmov (!%p344_p9), 0   ;;  %v1383_v2 = vmov (!%p344_p9), 0.0   ;;  %v1384_v3 = vmov (!%p344_p9), 0   ;;  %v407_v4 = vld [vmem:[%s1708_s2] sm:$0xff] (!%p344_p9) }
  0x11   : > { %347 = sbr.rel (%p344_p9) target bundleno = 1226 (0x4ca), region = 64  ;;  %1225 = vmatprep.subr.bf16.mxu0 (!%p344_p9), %v1381_v1  ;;  %p383_p10 = scmp.lt.s32.totalorder (!%p344_p9), %s1495_s30, 47  ;;  %1170 = vmatprep.mubr.msk.f32.mxu0 (!%p344_p9), %vm1382_vm0, %v1383_v2  ;;  %v409_v5 = vld [vmem:[%s1708_s2 + $0x10] sm:$0xf] (!%p344_p9)  ;;  %vm425_vm1 = vcmask (!%p344_p9), 375808   ;;  %v408_v6 = vld [vmem:[%s1708_s2 + $0x8] sm:$0xff] (!%p344_p9) }
  0x12   : > { %1315 = vset.pattern.permute.xlu0 (!%p344_p9), %v1384_v3  ;;  %1316 = vset.pattern.permute.xlu1 (!%p344_p9), %v1384_v3  ;;  %v569_v7 = vld [vmem:[%s1710_s4] sm:$0xff] (!%p344_p9)  ;;  %vm1526_vm2 = vmpackc.low (!%p344_p9), %vm425_vm1, %vm425_vm1  ;;  %v570_v12 = vld [vmem:[%s1710_s4 + $0x8] sm:$0xff] (!%p344_p9)  ;;  %vm597_vm3 = vcmask (!%p344_p9), 1043456   ;;  %vm587_vm4 = vcmask (!%p344_p9), 162816   ;;  %vm915_vm5 = vcmask (!%p344_p9), 1041408   ;;  %vm1385_vm6 = vmmov (!%p344_p9), 1  }
  0x13   : > { %412 = vperm.xlu0 (!%p344_p9), %1315, %v407_v4   ;;  %1257 = vmatprep.subr.bf16.mxu1 (!%p344_p9), %v1381_v1  ;;  %v571_v13 = vld [vmem:[%s1710_s4 + $0x10] sm:$0xf] (!%p344_p9)  ;;  %v687_v16 = vld [vmem:[%s1712_s6] sm:$0xff] (!%p344_p9)  ;;  %v688_v17 = vld [vmem:[%s1712_s6 + $0x8] sm:$0xff] (!%p344_p9)  ;;  %vm911_vm8 = vcmask (!%p344_p9), 80896   ;;  %s380_s23 = sand.u32 (!%p344_p9), 1, %s1371_s20  }
  0x14   : > { %422 = vperm.xlu1 (!%p344_p9), %1316, %v409_v5   ;;  %1185 = vmatprep.mubr.msk.f32.mxu1 (!%p344_p9), %vm1382_vm0, %v1383_v2  ;;  %v689_v19 = vld [vmem:[%s1712_s6 + $0x10] sm:$0xf] (!%p344_p9)  ;;  %v802_v20 = vld [vmem:[%s1714_s8] sm:$0xff] (!%p344_p9)  ;;  %v803_v23 = vld [vmem:[%s1714_s8 + $0x8] sm:$0x3] (!%p344_p9)  ;;  %s381_s25 = scalar_lea.vmem (!%p344_p9), [#allocation3], %s380_s23 }
  0x15   : > { %v901_v24 = vld [vmem:[#allocation2] sm:$0x1] (!%p344_p9)  ;;  %v405_v42 = vld [vmem:[%s1707_s1 + $0x8] sm:$0xff] (!%p344_p9)  ;;  %v406_v43 = vld [vmem:[%s1707_s1 + $0x10] sm:$0xf] (!%p344_p9)  ;;  %s991_s15 = scalar_lea.sflag (!%p344_p9), [#allocation4], %s380_s23 }
  0x16   : > { %v404_v41 = vld [vmem:[%s1707_s1] sm:$0xff] (!%p344_p9)  ;;  %v567_v61 = vld [vmem:[%s1709_s3 + $0x8] sm:$0xff] (!%p344_p9)  ;;  %v568_v62 = vld [vmem:[%s1709_s3 + $0x10] sm:$0xf] (!%p344_p9)  ;;  %s1386_s17 = smov (!%p344_p9), [#allocation3]  }
  0x17   : > { %417 = vperm.xlu0 (!%p344_p9), %1315, %v408_v6   ;;  %v566_v60 = vld [vmem:[%s1709_s3] sm:$0xff] (!%p344_p9)  ;;  %vm1269_vm7 = vmpackc.low (!%p344_p9), %vm915_vm5, %vm1385_vm6  ;;  %s1321_s18 = sshll.u32 (!%p344_p9), %s1386_s17, 4  ;;  %s1322_s18 = int_to_ptr.vmem [resolvable:$false] %s1321_s18 }
  0x18   : > { %s384_s14 = scalar_select %p383_p10, %s1495_s30, 47  ;;  %574 = vperm.xlu1 %1316, %v569_v7  }
  0x1a   : > { %s1063_s10 = sshll.u32 %s384_s14, 3  ;;  %s1664_s14 = scalar_lea.hbm %s1717_s11, %s1495_s30 }
  0x1b   : > { %s1520_s13 = scalar_lea.vmem %s1706_s0, %s1063_s10  ;;  %579 = vperm.xlu0 %1315, %v570_v12   ;;  %s1323_s10 = scalar_lea.vmem %s1322_s18, 32 }
  0x1c   : > { %v388_v8 = vld [vmem:[%s1520_s13] sm:$0xff]  ;;  %v389_v9 = vld [vmem:[%s1520_s13 + $0x8] sm:$0xff]  ;;  %v390_v14 = vld [vmem:[%s1520_s13 + $0x10] sm:$0xff]  ;;  %584 = vperm.xlu1 %1316, %v571_v13  }
  0x1d   : > { %v1226_v11 = vpack.c.bf16 %v389_v9, %v388_v8  ;;  %v391_v15 = vld [vmem:[%s1520_s13 + $0x18] sm:$0xff]  ;;  %v392_v21 = vld [vmem:[%s1520_s13 + $0x20] sm:$0xff]  ;;  %v393_v22 = vld [vmem:[%s1520_s13 + $0x28] sm:$0xff] }
  0x1e   : > { %v1230_v18 = vpack.c.bf16 %v391_v15, %v390_v14  ;;  %v1234_v25 = vpack.c.bf16 %v393_v22, %v392_v21  ;;  %v394_v26 = vld [vmem:[%s1520_s13 + $0x30] sm:$0xff]  ;;  %v395_v27 = vld [vmem:[%s1520_s13 + $0x38] sm:$0xff]  ;;  %v396_v29 = vld [vmem:[%s1520_s13 + $0x40] sm:$0xff] }
  0x1f   : > { %1228 = vmatpush3.bf16.xpose.msk.msra.mxu0 %vm1526_vm2, %v1226_v11  ;;  %692 = vperm.xlu0 %1315, %v687_v16   ;;  %v1238_v28 = vpack.c.bf16 %v395_v27, %v394_v26  ;;  %v397_v30 = vld [vmem:[%s1520_s13 + $0x48] sm:$0xff]  ;;  %v398_v32 = vld [vmem:[%s1520_s13 + $0x50] sm:$0xff]  ;;  %v399_v33 = vld [vmem:[%s1520_s13 + $0x58] sm:$0xff] }
  0x20   : > { %1229 = vmatprep.subr.bf16.mxu0 %v1381_v1  ;;  %697 = vperm.xlu1 %1316, %v688_v17   ;;  %v1242_v31 = vpack.c.bf16 %v397_v30, %v396_v29  ;;  %v1246_v34 = vpack.c.bf16 %v399_v33, %v398_v32  ;;  %v400_v35 = vld [vmem:[%s1520_s13 + $0x60] sm:$0xff]  ;;  %v401_v36 = vld [vmem:[%s1520_s13 + $0x68] sm:$0xff]  ;;  %v402_v38 = vld [vmem:[%s1520_s13 + $0x70] sm:$0xff] }
  0x21   : > { %v1250_v37 = vpack.c.bf16 %v401_v36, %v400_v35  ;;  %v403_v39 = vld [vmem:[%s1520_s13 + $0x78] sm:$0xff]  ;;  %v684_v17 = vld [vmem:[%s1711_s5] sm:$0xff]  ;;  %s1003_s13 = sshll.u32 %s381_s25, 4  ;;  %s1666_s13 = int_to_ptr.vmem [resolvable:$true] %s1003_s13 }
  0x22   : > { %v1254_v40 = vpack.c.bf16 %v403_v39, %v402_v38  ;;  %s1317_s16 = scalar_lea.vmem %s1666_s13, 16  ;;  %p1324_p0 = scmp.lt.s32.totalorder %s1666_s13, %s1322_s18 }
  0x23   : > { %702 = vperm.xlu0 %1315, %v689_v19   ;;  %v686_v19 = vld [vmem:[%s1711_s5 + $0x10] sm:$0xf]  ;;  %p1318_p11 = scmp.ne.s32.totalorder %s1666_s13, %s1317_s16  ;;  %p1325_p1 = scmp.lt.s32.totalorder %s1323_s10, %s1317_s16 }
  0x24   : > { %806 = vperm.xlu1 %1316, %v802_v20   ;;  %v800_v20 = vld [vmem:[%s1713_s7] sm:$0xff] }
  0x25   : > { %p1319_p12 = pnand %p1318_p11, %p1485_p5  ;;  %p1326_p2 = por %p1325_p1, %p1324_p0 }
  0x27   : > { %1232 = vmatpush3.bf16.xpose.msk.msra.mxu0 %vm1526_vm2, %v1230_v18  ;;  %811 = vperm.xlu0 %1315, %v803_v23   ;;  %v685_v18 = vld [vmem:[%s1711_s5 + $0x8] sm:$0xff]  ;;  %p1320_p13 = pneg %p1319_p12 }
  0x28   : > { %1233 = vmatprep.subr.bf16.mxu0 %v1381_v1  ;;  %904 = vperm.xlu1 %1316, %v901_v24  }
  0x29   : > { %p1327_p3 = pnand %p1326_p2, %p1320_p13 }
  0x2f   : > { %1236 = vmatpush3.bf16.xpose.msk.msra.mxu0 %vm1526_vm2, %v1234_v25 }
  0x30   : > { %1237 = vmatprep.subr.bf16.mxu0 %v1381_v1 }
  0x37   : > { %1240 = vmatpush3.bf16.xpose.msk.msra.mxu0 %vm1526_vm2, %v1238_v28 }
  0x38   : > { %1241 = vmatprep.subr.bf16.mxu0 %v1381_v1 }
  0x3f   : > { %1244 = vmatpush3.bf16.xpose.msk.msra.mxu0 %vm1526_vm2, %v1242_v31 }
  0x40   : > { %1245 = vmatprep.subr.bf16.mxu0 %v1381_v1 }
  0x47   : > { %1248 = vmatpush3.bf16.xpose.msk.msra.mxu0 %vm1526_vm2, %v1246_v34 }
  0x48   : > { %1249 = vmatprep.subr.bf16.mxu0 %v1381_v1 }
  0x4f   : > { %1252 = vmatpush3.bf16.xpose.msk.msra.mxu0 %vm1526_vm2, %v1250_v37  ;;  %v801_v37 = vld [vmem:[%s1713_s7 + $0x8] sm:$0x3] }
  0x50   : > { %1253 = vmatprep.subr.bf16.mxu0 %v1381_v1 }
  0x57   : > { %1256 = vmatpush3.bf16.xpose.msk.msra.mxu0 %vm1526_vm2, %v1254_v40 }
  0x5e   : > { %1171 = vmatmul.mubr.msk.f32.vlgmr.msra.gmra.mrb[0].mxu0 %vm425_vm1, %v404_v41 }
  0x5f   : > { %1173 = vmatprep.mubr.msk.f32.mxu0 %vm1382_vm0, %v1383_v2 }
  0x62   : > { %1174 = vmatmul.mubr.msk.f32.gmra.mrb[2].mxu0 %vm425_vm1, %v405_v42 }
  0x63   : > { %1176 = vmatprep.mubr.msk.f32.mxu0 %vm1382_vm0, %v1383_v2 }
  0x66   : > { %1177 = vmatmul.mubr.msk.f32.gmra.mrb[4].mxu0 %vm425_vm1, %v406_v43 }
  0x92   : > { %v413_v44 = vpop.permute.xlu0 %412 }
  0x93   : > { %v423_v54 = vpop.permute.xlu1 %422 }
  0x96   : > { %v418_v48 = vpop.permute.xlu0 %417 }
  0x97   : > { %v575_v3 = vpop.permute.xlu1 %574 }
  0x9a   : > { %v580_v5 = vpop.permute.xlu0 %579 }
  0x9b   : > { %v585_v11 = vpop.permute.xlu1 %584 }
  0x9e   : > { %v693_v23 = vpop.permute.xlu0 %692 }
  0x9f   : > { %v698_v25 = vpop.permute.xlu1 %697 }
  0xa2   : > { %v703_v31 = vpop.permute.xlu0 %702 }
  0xa3   : > { %v807_v40 = vpop.permute.xlu1 %806 }
  0xa6   : > { %v812_v38 = vpop.permute.xlu0 %811 }
 0x131   : > { %v549_v45 = vpop.f32.mrb[0].mxu0 }
 0x132   : > { %v1172_v46 = vpop.f32.mrb[1].mxu0  ;;  %v550_v47 = vadd.f32 %v549_v45, %v413_v44 }
 0x134   : > { %v563_v52 = vmax.f32 %v550_v47, 0.0 }
 0x135   : > { %v554_v49 = vpop.f32.mrb[2].mxu0 }
 0x136   : > { %v555_v50 = vadd.f32 %v554_v49, %v418_v48  ;;  %v1175_v51 = vpop.f32.mrb[3].mxu0  ;;  %v905_v49 = vpop.permute.xlu1 %904 }
 0x138   : > { %v564_v53 = vmax.f32 %v555_v50, 0.0 }
 0x139   : > { %v559_v55 = vpop.f32.mrb[4].mxu0 }
 0x13a   : > { %v560_v56 = vadd.f32 %v559_v55, %v423_v54  ;;  %v1178_v57 = vpop.f32.mrb[5].mxu0  ;;  %v1258_v58 = vpack.c.bf16 %v564_v53, %v563_v52 }
 0x13c   : > { %v565_v59 = vmax.f32 %v560_v56, 0.0  ;;  %1259 = vmatpush3.bf16.msra.mxu1 %v1258_v58 }
 0x13d   : > { %1183 = vmatprep.subr.mxu1 %v1383_v2 }
 0x140   : > { %1184 = vmatpush3.msk.msra.mxu1 %vm597_vm3, %v565_v59 }
 0x141   : > { %1186 = vmatmul.mubr.msk.f32.vlgmr.msra.gmra.mrb[0].mxu1 %vm587_vm4, %v566_v60  ;;  %1260 = vmatprep.subr.bf16.mxu1 %v1381_v1 }
 0x142   : > { %1188 = vmatprep.mubr.msk.f32.mxu1 %vm1382_vm0, %v1383_v2 }
 0x145   : > { %1189 = vmatmul.mubr.msk.f32.gmra.mrb[2].mxu1 %vm587_vm4, %v567_v61 }
 0x146   : > { %1191 = vmatprep.mubr.msk.f32.mxu1 %vm1382_vm0, %v1383_v2 }
 0x149   : > { %1192 = vmatmul.mubr.msk.f32.gmra.mrb[4].mxu1 %vm587_vm4, %v568_v62 }
 0x14a   : > { %1200 = vmatprep.mubr.msk.f32.mxu1 %vm1382_vm0, %v1383_v2 }
 0x214   : > { %v667_v63 = vpop.f32.mrb[0].mxu1 }
 0x215   : > { %v1187_v0 = vpop.f32.mrb[1].mxu1  ;;  %v668_v4 = vadd.f32 %v667_v63, %v575_v3 }
 0x217   : > { %v681_v9 = vmax.f32 %v668_v4, 0.0 }
 0x218   : > { %v672_v6 = vpop.f32.mrb[2].mxu1 }
 0x219   : > { %v673_v7 = vadd.f32 %v672_v6, %v580_v5  ;;  %v1190_v8 = vpop.f32.mrb[3].mxu1 }
 0x21b   : > { %v682_v10 = vmax.f32 %v673_v7, 0.0 }
 0x21c   : > { %v677_v12 = vpop.f32.mrb[4].mxu1 }
 0x21d   : > { %v1261_v13 = vpack.c.bf16 %v682_v10, %v681_v9  ;;  %v678_v14 = vadd.f32 %v677_v12, %v585_v11  ;;  %v1193_v15 = vpop.f32.mrb[5].mxu1 }
 0x21f   : > { %1262 = vmatpush3.bf16.msra.mxu1 %v1261_v13  ;;  %v683_v16 = vmax.f32 %v678_v14, 0.0 }
 0x220   : > { %1198 = vmatprep.subr.mxu1 %v1383_v2 }
 0x223   : > { %1199 = vmatpush3.msk.msra.mxu1 %vm597_vm3, %v683_v16 }
 0x224   : > { %1201 = vmatmul.mubr.msk.f32.vlgmr.msra.gmra.mrb[6].mxu1 %vm587_vm4, %v684_v17 }
 0x225   : > { %1203 = vmatprep.mubr.msk.f32.mxu1 %vm1382_vm0, %v1383_v2 }
 0x228   : > { %1204 = vmatmul.mubr.msk.f32.gmra.mrb[8].mxu1 %vm587_vm4, %v685_v18 }
 0x229   : > { %1206 = vmatprep.mubr.msk.f32.mxu1 %vm1382_vm0, %v1383_v2 }
 0x22c   : > { %1207 = vmatmul.mubr.msk.f32.gmra.mrb[10].mxu1 %vm587_vm4, %v686_v19 }
 0x22d   : > { %1215 = vmatprep.mubr.msk.f32.mxu1 %vm587_vm4, %v800_v20 }
 0x2f7   : > { %v783_v21 = vpop.f32.mrb[6].mxu1 }
 0x2f8   : > { %v1202_v22 = vpop.f32.mrb[7].mxu1  ;;  %v784_v24 = vadd.f32 %v783_v21, %v693_v23 }
 0x2fa   : > { %v797_v29 = vmax.f32 %v784_v24, 0.0 }
 0x2fb   : > { %v788_v26 = vpop.f32.mrb[8].mxu1 }
 0x2fc   : > { %v789_v27 = vadd.f32 %v788_v26, %v698_v25  ;;  %v1205_v28 = vpop.f32.mrb[9].mxu1 }
 0x2fe   : > { %v798_v30 = vmax.f32 %v789_v27, 0.0 }
 0x2ff   : > { %v793_v32 = vpop.f32.mrb[10].mxu1 }
 0x300   : > { %v1263_v33 = vpack.c.bf16 %v798_v30, %v797_v29  ;;  %v794_v34 = vadd.f32 %v793_v32, %v703_v31  ;;  %v1208_v35 = vpop.f32.mrb[11].mxu1 }
 0x302   : > { %v799_v36 = vmax.f32 %v794_v34, 0.0  ;;  %1264 = vmatprep.subr.bf16.mxu1 %v1263_v33 }
 0x303   : > { %1266 = vmatpush3.bf16.msra.mxu1 %v1263_v33 }
 0x304   : > { %1213 = vmatprep.subr.msk.mxu1 %vm597_vm3, %v799_v36 }
 0x307   : > { %1214 = vmatpush3.msk.msra.mxu1 %vm597_vm3, %v799_v36 }
 0x308   : > { %1216 = vmatmul.mubr.msk.f32.vlgmr.msra.gmra.mrb[12].mxu1 %vm587_vm4, %v801_v37  ;;  %1267 = vmatprep.subr.bf16.mxu1 %v1381_v1  ;;  %v900_v1 = vld [vmem:[%s1715_s9] sm:$0x1] }
 0x309   : > { %1222 = vmatprep.mubr.msk.f32.mxu1 %vm1382_vm0, %v1383_v2  ;;  %v907_v2 = vlaneseq }
 0x30b   : > { %v908_v47 = vshrl.u32 %v907_v2, 7 }
 0x30d   : > { %v909_v48 = vsub.s32 0, %v908_v47 }
 0x30f   : > { %v910_v50 = vrot.slane %v905_v49, %v909_v48 }
 0x3db   : > { %v1217_v39 = vpop.f32.mrb[12].mxu1 }
 0x3dc   : > { %v895_v41 = vadd.f32 %v1217_v39, %v812_v38  ;;  %v889_v42 = vpop.f32.mrb[13].mxu1 }
 0x3dd   : > { %v890_v43 = vadd.f32 %v889_v42, %v807_v40 }
 0x3de   : > { %v899_v44 = vmax.f32 %v895_v41, 0.0 }
 0x3df   : > { %v898_v45 = vmax.f32 %v890_v43, 0.0 }
 0x3e1   : > { %v1268_v46 = vpack.c.bf16 %v899_v44, %v898_v45 }
 0x3e3   : > { %1270 = vmatpush3.bf16.msk.msra.mxu1 %vm1269_vm7, %v1268_v46 }
 0x3e6   : > { %1223 = vmatmul.mubr.msk.f32.vlgmr.msra.gmra.mrb[14].mxu1 %vm911_vm8, %v900_v1 }
 0x4b9   : > { %v985_v51 = vpop.f32.mrb[14].mxu1 }
 0x4ba   : > { %v986_v52 = vadd.f32 %v985_v51, %v910_v50  ;;  %v1224_v53 = vpop.f32.mrb[15].mxu1 }
 0x4bc   : > { %989 = vst [vmem:[%s381_s25] sm:$0x1] %v986_v52 }
 0x4bd   : > { %1330 = shalt.err (!%p1327_p3)
}
 0x4be   : > { %s1331_s30 = scalar_lea.hbm %s1664_s14, 16  ;;  %s1335_s26 = scalar_lea.hbm %s1717_s11, 48 }
 0x4bf   : > { %p1332_p4 = scmp.ne.s32.totalorder %s1664_s14, %s1331_s30  ;;  %p1336_p9 = scmp.lt.u32.totalorder %s1664_s14, %s1717_s11 }
 0x4c0   : > { %p1337_p10 = scmp.lt.u32.totalorder %s1335_s26, %s1331_s30  ;;  %p1339_p12 = scmp.lt.u32.totalorder %s1331_s30, %s1664_s14 }
 0x4c1   : > { %p1333_p7 = pnand %p1332_p4, %p1485_p5 }
 0x4c2   : > { %p1338_p11 = por %p1337_p10, %p1336_p9 }
 0x4c3   : > { %p1334_p8 = pneg %p1333_p7 }
 0x4c4   : > { %p1340_p13 = por %p1339_p12, %p1338_p11 }
 0x4c6   : > { %p1341_p0 = pnand %p1340_p13, %p1334_p8 }
 0x4c8   : > { %1344 = shalt.err (!%p1341_p0)
}
 0x4c9   : > { %1271 = dma.vmem_to_hbm [thread:$0]  (%p1485_p5), %s1666_s13, 16, %s1664_s14, %s991_s15  }
 0x4ca PF: > { %p1277_p1 = scmp.ge.s32.totalorder %s1379_s22, 2  ;;  %s1015_s16 = sand.u32 1, %s1367_s19  }
 0x4cb   : > { %s1016_s18 = scalar_lea.sflag [#allocation4], %s1015_s16 }
 0x4cc   : > { %p1274_p2 = pnand %p1277_p1, %p1489_p6 }
 0x4ce   : > { %1362 = dma.done.wait (!%p1274_p2), %s1016_s18, 16  }
 0x4cf   : > { %1364 = vsyncadd (!%p1274_p2), %s1016_s18, 4294967280  ;;  %p23_p3 = scmp.ge.s32.totalorder %s1473_s24, 5   ;;  %s1722_s19 = smov %s1371_s20 }
 0x4d0   : > { %s1723_s20 = smov %s1375_s21  ;;  %s1724_s21 = smov %s1483_s27 }
 0x4d1   : > { %s1725_s22 = smov %s1473_s24  ;;  %25 = sbr.rel (!%p23_p3) target bundleno = 6 (0x6), region = 99 }
 0x4d8   :  { %1020 = vsyncpa [#allocation4], 1 }
 0x4d9   :  { %1022 = vsyncpa [#allocation4 + $0x1], 1 }

</bundles_post_ra>
